<compile_context>
chip_gen: v7x
topology: tpu7x:2x2x1
jax: 0.10.0
libtpu: 0.0.40
codegen_flags: <defaults>
</compile_context>

<pallas_src>
import functools

import jax
import jax.numpy as jnp
from jax.experimental import pallas as pl
from jax.experimental.pallas import tpu as pltpu


_NEG_INF = -1e30  # finite "-inf": exp() underflows to 0, never produces NaN


def _gather_rows(idx_sref, emb_hbm, rows, sems, base, block_rows):
    """rows[r] <- emb_hbm[idx[base + r]] via one async HBM->VMEM DMA per row."""
    for r in range(block_rows):
        tok = idx_sref[base + r]                       # scalar token id from SMEM
        pltpu.make_async_copy(emb_hbm.at[tok], rows.at[r], sems.at[r]).start()
    for r in range(block_rows):
        # Source index is irrelevant for the wait (transfer sizes match).
        pltpu.make_async_copy(emb_hbm.at[0], rows.at[r], sems.at[r]).wait()


def _bigram_loss_kernel(idx_sref, tgt_ref, emb_hbm, logits_ref, loss_ref,
                        rows, sems, *, block_rows, n_valid):
    step = pl.program_id(0)
    base = step * block_rows

    _gather_rows(idx_sref, emb_hbm, rows, sems, base, block_rows)

    logits = rows[...]                                  # (R, V_pad) f32, lane-dense
    logits_ref[...] = logits

    # Cross entropy: logsumexp(logits) - logits[target]; lane-axis (XLU) reductions.
    m = jnp.max(logits, axis=-1, keepdims=True)                              # (R, 1)
    lse = jnp.log(jnp.sum(jnp.exp(logits - m), axis=-1, keepdims=True)) + m  # (R, 1)

    cols = jax.lax.broadcasted_iota(jnp.int32, logits.shape, 1)              # (R, V_pad)
    tgt = tgt_ref[...]                                                       # (R, 1) int32
    tgt_logit = jnp.sum(jnp.where(cols == tgt, logits, 0.0),
                        axis=-1, keepdims=True)                              # (R, 1)

    # Mask rows that are pure padding (N rounded up to a multiple of block_rows).
    row_ids = base + jax.lax.broadcasted_iota(jnp.int32, (block_rows, 1), 0)
    per_row = jnp.where(row_ids < n_valid, lse - tgt_logit, 0.0)

    @pl.when(step == 0)
    def _init():
        loss_ref[...] = jnp.zeros_like(loss_ref)

    loss_ref[...] += jnp.sum(per_row, axis=0, keepdims=True)                 # (1, 1)

    @pl.when(step == pl.num_programs(0) - 1)
    def _finalize():
        loss_ref[...] = loss_ref[...] * (1.0 / n_valid)


def _bigram_logits_kernel(idx_sref, emb_hbm, logits_ref, rows, sems, *, block_rows):
    step = pl.program_id(0)
    base = step * block_rows
    _gather_rows(idx_sref, emb_hbm, rows, sems, base, block_rows)
    logits_ref[...] = rows[...]


def bigram_forward(idx, emb_table, targets=None, *, block_rows=8):
    """JAX wrapper mirroring BigramLanquageModel.forward.

    idx:       (B, T) int token ids
    emb_table: (V, V) float32 embedding table (nn.Embedding weight)
    targets:   optional (B, T) int token ids
    returns (logits (B, T, V) float32, loss scalar float32 or None)
    """
    B, T = idx.shape
    V = emb_table.shape[0]
    N = B * T

    v_pad = (V + 127) // 128 * 128
    n_pad = (N + block_rows - 1) // block_rows * block_rows
    num_blocks = n_pad // block_rows

    # Pad vocab/lane axis to 128 with a large negative so padded columns are inert
    # under max / logsumexp; they are sliced away again below.
    emb_padded = jnp.pad(emb_table.astype(jnp.float32),
                         ((0, 0), (0, v_pad - V)), constant_values=_NEG_INF)
    idx_flat = jnp.pad(idx.reshape(-1).astype(jnp.int32), (0, n_pad - N))

    out_logits = jax.ShapeDtypeStruct((n_pad, v_pad), jnp.float32)
    scratch = [pltpu.VMEM((block_rows, v_pad), jnp.float32),
               pltpu.SemaphoreType.DMA((block_rows,))]
    emb_spec = pl.BlockSpec(memory_space=pl.ANY)        # table stays in HBM
    logits_spec = pl.BlockSpec((block_rows, v_pad), lambda i, ids: (i, 0))

    if targets is None:
        kernel = functools.partial(_bigram_logits_kernel, block_rows=block_rows)
        grid_spec = pltpu.PrefetchScalarGridSpec(
            num_scalar_prefetch=1,
            grid=(num_blocks,),
            in_specs=[emb_spec],
            out_specs=logits_spec,
            scratch_shapes=scratch)
        logits_flat = pl.pallas_call(
            kernel,
            out_shape=out_logits,
            grid_spec=grid_spec,
            compiler_params=pltpu.CompilerParams(
                dimension_semantics=("arbitrary",)),
        )(idx_flat, emb_padded)
        loss = None
    else:
        tgt_col = jnp.pad(targets.reshape(-1).astype(jnp.int32),
                          (0, n_pad - N)).reshape(n_pad, 1)
        kernel = functools.partial(_bigram_loss_kernel,
                                   block_rows=block_rows, n_valid=N)
        grid_spec = pltpu.PrefetchScalarGridSpec(
            num_scalar_prefetch=1,
            grid=(num_blocks,),
            in_specs=[pl.BlockSpec((block_rows, 1), lambda i, ids: (i, 0)),
                      emb_spec],
            out_specs=(logits_spec,
                       pl.BlockSpec((1, 1), lambda i, ids: (0, 0))),
            scratch_shapes=scratch)
        logits_flat, loss2d = pl.pallas_call(
            kernel,
            out_shape=(out_logits, jax.ShapeDtypeStruct((1, 1), jnp.float32)),
            grid_spec=grid_spec,
            # Loss accumulates across the N-grid axis -> "arbitrary".
            compiler_params=pltpu.CompilerParams(
                dimension_semantics=("arbitrary",)),
        )(idx_flat, tgt_col, emb_padded)
        loss = loss2d[0, 0]

    logits = logits_flat[:N, :V].reshape(B, T, V)
    return logits, loss


if __name__ == "__main__":
    key = jax.random.PRNGKey(0)
    k_emb, k_idx, k_tgt = jax.random.split(key, 3)

    vocab_size = 65   # e.g. tiny-shakespeare char vocab
    B, T = 2, 8

    # nn.Embedding default init: N(0, 1)
    emb_table = jax.random.normal(k_emb, (vocab_size, vocab_size), dtype=jnp.float32)
    idx = jax.random.randint(k_idx, (B, T), 0, vocab_size, dtype=jnp.int32)
    targets = jax.random.randint(k_tgt, (B, T), 0, vocab_size, dtype=jnp.int32)

    # Training path (logits + loss).
    logits, loss = bigram_forward(idx, emb_table, targets)
    logits = jax.block_until_ready(logits)
    loss = jax.block_until_ready(loss)

    # Inference path (no targets -> no loss computation).
    logits_nl, loss_nl = bigram_forward(idx, emb_table, None)
    logits_nl = jax.block_until_ready(logits_nl)

    # Pure-JAX reference check (embedding lookup + cross entropy).
    ref_logits = emb_table[idx]                                   # (B, T, V)
    flat = ref_logits.reshape(B * T, vocab_size)
    tgt = targets.reshape(-1)
    ref_lse = jax.scipy.special.logsumexp(flat, axis=-1)
    ref_loss = jnp.mean(ref_lse - flat[jnp.arange(B * T), tgt])

    assert logits.shape == (B, T, vocab_size)
    assert loss_nl is None
    assert jnp.allclose(logits, ref_logits, atol=1e-5)
    assert jnp.allclose(logits_nl, ref_logits, atol=1e-5)
    assert jnp.allclose(loss, ref_loss, atol=1e-5)

    # TODO(synk): generate() (autoregressive multinomial sampling loop) is host-side
    # control flow in the original module and is not part of forward(); not implemented.
    print("KERNEL_OK")
</pallas_src>

<mosaic_0001>
module attributes {stable_mosaic.version = 11 : i64} {
  func.func @_bigram_loss_kernel(%arg0: i32, %arg1: memref<16xi32, #tpu.memory_space<smem>>, %arg2: memref<8x1xi32, #tpu.memory_space<vmem>>, %arg3: memref<65x128xf32, #tpu.memory_space<any>>, %arg4: memref<8x128xf32, #tpu.memory_space<vmem>>, %arg5: memref<1x1xf32, #tpu.memory_space<vmem>>, %arg6: memref<8x128xf32, #tpu.memory_space<vmem>>, %arg7: memref<8x!tpu.dma_semaphore, #tpu.memory_space<semaphore_mem>>) attributes {dimension_semantics = [#tpu.dimension_semantics<arbitrary>], iteration_bounds = array<i64: 2>, scalar_prefetch = 1 : i64, scratch_operands = 2 : i64, tpu.core_type = #tpu.core_type<tc>, window_params = [{transform_indices = @transform_0, window_bounds = array<i64: 8, 1>}, {}, {transform_indices = @transform_2, window_bounds = array<i64: 8, 128>}, {pipeline_mode = #tpu.pipeline_mode<synchronous>, transform_indices = @transform_3, window_bounds = array<i64: 1, 1>}]} {
    %c8_i32 = arith.constant 8 : i32
    %0 = arith.muli %arg0, %c8_i32 : i32
    %c0_i32 = arith.constant 0 : i32
    %1 = arith.addi %0, %c0_i32 : i32
    %2 = arith.index_cast %1 : i32 to index
    %3 = memref.load %arg1[%2] : memref<16xi32, #tpu.memory_space<smem>>
    %c0_i32_0 = arith.constant 0 : i32
    %c0_i32_1 = arith.constant 0 : i32
    %c0_i32_2 = arith.constant 0 : i32
    %4 = tpu.memref_slice %arg3[%3, %c0_i32_2] : memref<65x128xf32, #tpu.memory_space<any>> -> memref<1x128xf32, #tpu.memory_space<any>>
    %5 = tpu.memref_squeeze %4 : memref<1x128xf32, #tpu.memory_space<any>> -> memref<128xf32, #tpu.memory_space<any>>
    %c0_i32_3 = arith.constant 0 : i32
    %6 = tpu.memref_slice %arg6[%c0_i32_0, %c0_i32_3] : memref<8x128xf32, #tpu.memory_space<vmem>> -> memref<1x128xf32, #tpu.memory_space<vmem>>
    %7 = tpu.memref_squeeze %6 : memref<1x128xf32, #tpu.memory_space<vmem>> -> memref<128xf32, #tpu.memory_space<vmem>>
    %8 = tpu.memref_slice %arg7[%c0_i32_1] : memref<8x!tpu.dma_semaphore, #tpu.memory_space<semaphore_mem>> -> memref<1x!tpu.dma_semaphore, #tpu.memory_space<semaphore_mem>>
    %9 = tpu.memref_squeeze %8 : memref<1x!tpu.dma_semaphore, #tpu.memory_space<semaphore_mem>> -> memref<!tpu.dma_semaphore, #tpu.memory_space<semaphore_mem>>
    tpu.enqueue_dma source(%5 : memref<128xf32, #tpu.memory_space<any>>) target(%7 : memref<128xf32, #tpu.memory_space<vmem>>) target_semaphore(%9 : memref<!tpu.dma_semaphore, #tpu.memory_space<semaphore_mem>>)
    %c1_i32 = arith.constant 1 : i32
    %10 = arith.addi %0, %c1_i32 : i32
    %11 = arith.index_cast %10 : i32 to index
    %12 = memref.load %arg1[%11] : memref<16xi32, #tpu.memory_space<smem>>
    %c1_i32_4 = arith.constant 1 : i32
    %c1_i32_5 = arith.constant 1 : i32
    %c0_i32_6 = arith.constant 0 : i32
    %13 = tpu.memref_slice %arg3[%12, %c0_i32_6] : memref<65x128xf32, #tpu.memory_space<any>> -> memref<1x128xf32, #tpu.memory_space<any>>
    %14 = tpu.memref_squeeze %13 : memref<1x128xf32, #tpu.memory_space<any>> -> memref<128xf32, #tpu.memory_space<any>>
    %c0_i32_7 = arith.constant 0 : i32
    %15 = tpu.memref_slice %arg6[%c1_i32_4, %c0_i32_7] : memref<8x128xf32, #tpu.memory_space<vmem>> -> memref<1x128xf32, #tpu.memory_space<vmem>>
    %16 = tpu.memref_squeeze %15 : memref<1x128xf32, #tpu.memory_space<vmem>> -> memref<128xf32, #tpu.memory_space<vmem>>
    %17 = tpu.memref_slice %arg7[%c1_i32_5] : memref<8x!tpu.dma_semaphore, #tpu.memory_space<semaphore_mem>> -> memref<1x!tpu.dma_semaphore, #tpu.memory_space<semaphore_mem>>
    %18 = tpu.memref_squeeze %17 : memref<1x!tpu.dma_semaphore, #tpu.memory_space<semaphore_mem>> -> memref<!tpu.dma_semaphore, #tpu.memory_space<semaphore_mem>>
    tpu.enqueue_dma source(%14 : memref<128xf32, #tpu.memory_space<any>>) target(%16 : memref<128xf32, #tpu.memory_space<vmem>>) target_semaphore(%18 : memref<!tpu.dma_semaphore, #tpu.memory_space<semaphore_mem>>)
    %c2_i32 = arith.constant 2 : i32
    %19 = arith.addi %0, %c2_i32 : i32
    %20 = arith.index_cast %19 : i32 to index
    %21 = memref.load %arg1[%20] : memref<16xi32, #tpu.memory_space<smem>>
    %c2_i32_8 = arith.constant 2 : i32
    %c2_i32_9 = arith.constant 2 : i32
    %c0_i32_10 = arith.constant 0 : i32
    %22 = tpu.memref_slice %arg3[%21, %c0_i32_10] : memref<65x128xf32, #tpu.memory_space<any>> -> memref<1x128xf32, #tpu.memory_space<any>>
    %23 = tpu.memref_squeeze %22 : memref<1x128xf32, #tpu.memory_space<any>> -> memref<128xf32, #tpu.memory_space<any>>
    %c0_i32_11 = arith.constant 0 : i32
    %24 = tpu.memref_slice %arg6[%c2_i32_8, %c0_i32_11] : memref<8x128xf32, #tpu.memory_space<vmem>> -> memref<1x128xf32, #tpu.memory_space<vmem>>
    %25 = tpu.memref_squeeze %24 : memref<1x128xf32, #tpu.memory_space<vmem>> -> memref<128xf32, #tpu.memory_space<vmem>>
    %26 = tpu.memref_slice %arg7[%c2_i32_9] : memref<8x!tpu.dma_semaphore, #tpu.memory_space<semaphore_mem>> -> memref<1x!tpu.dma_semaphore, #tpu.memory_space<semaphore_mem>>
    %27 = tpu.memref_squeeze %26 : memref<1x!tpu.dma_semaphore, #tpu.memory_space<semaphore_mem>> -> memref<!tpu.dma_semaphore, #tpu.memory_space<semaphore_mem>>
    tpu.enqueue_dma source(%23 : memref<128xf32, #tpu.memory_space<any>>) target(%25 : memref<128xf32, #tpu.memory_space<vmem>>) target_semaphore(%27 : memref<!tpu.dma_semaphore, #tpu.memory_space<semaphore_mem>>)
    %c3_i32 = arith.constant 3 : i32
    %28 = arith.addi %0, %c3_i32 : i32
    %29 = arith.index_cast %28 : i32 to index
    %30 = memref.load %arg1[%29] : memref<16xi32, #tpu.memory_space<smem>>
    %c3_i32_12 = arith.constant 3 : i32
    %c3_i32_13 = arith.constant 3 : i32
    %c0_i32_14 = arith.constant 0 : i32
    %31 = tpu.memref_slice %arg3[%30, %c0_i32_14] : memref<65x128xf32, #tpu.memory_space<any>> -> memref<1x128xf32, #tpu.memory_space<any>>
    %32 = tpu.memref_squeeze %31 : memref<1x128xf32, #tpu.memory_space<any>> -> memref<128xf32, #tpu.memory_space<any>>
    %c0_i32_15 = arith.constant 0 : i32
    %33 = tpu.memref_slice %arg6[%c3_i32_12, %c0_i32_15] : memref<8x128xf32, #tpu.memory_space<vmem>> -> memref<1x128xf32, #tpu.memory_space<vmem>>
    %34 = tpu.memref_squeeze %33 : memref<1x128xf32, #tpu.memory_space<vmem>> -> memref<128xf32, #tpu.memory_space<vmem>>
    %35 = tpu.memref_slice %arg7[%c3_i32_13] : memref<8x!tpu.dma_semaphore, #tpu.memory_space<semaphore_mem>> -> memref<1x!tpu.dma_semaphore, #tpu.memory_space<semaphore_mem>>
    %36 = tpu.memref_squeeze %35 : memref<1x!tpu.dma_semaphore, #tpu.memory_space<semaphore_mem>> -> memref<!tpu.dma_semaphore, #tpu.memory_space<semaphore_mem>>
    tpu.enqueue_dma source(%32 : memref<128xf32, #tpu.memory_space<any>>) target(%34 : memref<128xf32, #tpu.memory_space<vmem>>) target_semaphore(%36 : memref<!tpu.dma_semaphore, #tpu.memory_space<semaphore_mem>>)
    %c4_i32 = arith.constant 4 : i32
    %37 = arith.addi %0, %c4_i32 : i32
    %38 = arith.index_cast %37 : i32 to index
    %39 = memref.load %arg1[%38] : memref<16xi32, #tpu.memory_space<smem>>
    %c4_i32_16 = arith.constant 4 : i32
    %c4_i32_17 = arith.constant 4 : i32
    %c0_i32_18 = arith.constant 0 : i32
    %40 = tpu.memref_slice %arg3[%39, %c0_i32_18] : memref<65x128xf32, #tpu.memory_space<any>> -> memref<1x128xf32, #tpu.memory_space<any>>
    %41 = tpu.memref_squeeze %40 : memref<1x128xf32, #tpu.memory_space<any>> -> memref<128xf32, #tpu.memory_space<any>>
    %c0_i32_19 = arith.constant 0 : i32
    %42 = tpu.memref_slice %arg6[%c4_i32_16, %c0_i32_19] : memref<8x128xf32, #tpu.memory_space<vmem>> -> memref<1x128xf32, #tpu.memory_space<vmem>>
    %43 = tpu.memref_squeeze %42 : memref<1x128xf32, #tpu.memory_space<vmem>> -> memref<128xf32, #tpu.memory_space<vmem>>
    %44 = tpu.memref_slice %arg7[%c4_i32_17] : memref<8x!tpu.dma_semaphore, #tpu.memory_space<semaphore_mem>> -> memref<1x!tpu.dma_semaphore, #tpu.memory_space<semaphore_mem>>
    %45 = tpu.memref_squeeze %44 : memref<1x!tpu.dma_semaphore, #tpu.memory_space<semaphore_mem>> -> memref<!tpu.dma_semaphore, #tpu.memory_space<semaphore_mem>>
    tpu.enqueue_dma source(%41 : memref<128xf32, #tpu.memory_space<any>>) target(%43 : memref<128xf32, #tpu.memory_space<vmem>>) target_semaphore(%45 : memref<!tpu.dma_semaphore, #tpu.memory_space<semaphore_mem>>)
    %c5_i32 = arith.constant 5 : i32
    %46 = arith.addi %0, %c5_i32 : i32
    %47 = arith.index_cast %46 : i32 to index
    %48 = memref.load %arg1[%47] : memref<16xi32, #tpu.memory_space<smem>>
    %c5_i32_20 = arith.constant 5 : i32
    %c5_i32_21 = arith.constant 5 : i32
    %c0_i32_22 = arith.constant 0 : i32
    %49 = tpu.memref_slice %arg3[%48, %c0_i32_22] : memref<65x128xf32, #tpu.memory_space<any>> -> memref<1x128xf32, #tpu.memory_space<any>>
    %50 = tpu.memref_squeeze %49 : memref<1x128xf32, #tpu.memory_space<any>> -> memref<128xf32, #tpu.memory_space<any>>
    %c0_i32_23 = arith.constant 0 : i32
    %51 = tpu.memref_slice %arg6[%c5_i32_20, %c0_i32_23] : memref<8x128xf32, #tpu.memory_space<vmem>> -> memref<1x128xf32, #tpu.memory_space<vmem>>
    %52 = tpu.memref_squeeze %51 : memref<1x128xf32, #tpu.memory_space<vmem>> -> memref<128xf32, #tpu.memory_space<vmem>>
    %53 = tpu.memref_slice %arg7[%c5_i32_21] : memref<8x!tpu.dma_semaphore, #tpu.memory_space<semaphore_mem>> -> memref<1x!tpu.dma_semaphore, #tpu.memory_space<semaphore_mem>>
    %54 = tpu.memref_squeeze %53 : memref<1x!tpu.dma_semaphore, #tpu.memory_space<semaphore_mem>> -> memref<!tpu.dma_semaphore, #tpu.memory_space<semaphore_mem>>
    tpu.enqueue_dma source(%50 : memref<128xf32, #tpu.memory_space<any>>) target(%52 : memref<128xf32, #tpu.memory_space<vmem>>) target_semaphore(%54 : memref<!tpu.dma_semaphore, #tpu.memory_space<semaphore_mem>>)
    %c6_i32 = arith.constant 6 : i32
    %55 = arith.addi %0, %c6_i32 : i32
    %56 = arith.index_cast %55 : i32 to index
    %57 = memref.load %arg1[%56] : memref<16xi32, #tpu.memory_space<smem>>
    %c6_i32_24 = arith.constant 6 : i32
    %c6_i32_25 = arith.constant 6 : i32
    %c0_i32_26 = arith.constant 0 : i32
    %58 = tpu.memref_slice %arg3[%57, %c0_i32_26] : memref<65x128xf32, #tpu.memory_space<any>> -> memref<1x128xf32, #tpu.memory_space<any>>
    %59 = tpu.memref_squeeze %58 : memref<1x128xf32, #tpu.memory_space<any>> -> memref<128xf32, #tpu.memory_space<any>>
    %c0_i32_27 = arith.constant 0 : i32
    %60 = tpu.memref_slice %arg6[%c6_i32_24, %c0_i32_27] : memref<8x128xf32, #tpu.memory_space<vmem>> -> memref<1x128xf32, #tpu.memory_space<vmem>>
    %61 = tpu.memref_squeeze %60 : memref<1x128xf32, #tpu.memory_space<vmem>> -> memref<128xf32, #tpu.memory_space<vmem>>
    %62 = tpu.memref_slice %arg7[%c6_i32_25] : memref<8x!tpu.dma_semaphore, #tpu.memory_space<semaphore_mem>> -> memref<1x!tpu.dma_semaphore, #tpu.memory_space<semaphore_mem>>
    %63 = tpu.memref_squeeze %62 : memref<1x!tpu.dma_semaphore, #tpu.memory_space<semaphore_mem>> -> memref<!tpu.dma_semaphore, #tpu.memory_space<semaphore_mem>>
    tpu.enqueue_dma source(%59 : memref<128xf32, #tpu.memory_space<any>>) target(%61 : memref<128xf32, #tpu.memory_space<vmem>>) target_semaphore(%63 : memref<!tpu.dma_semaphore, #tpu.memory_space<semaphore_mem>>)
    %c7_i32 = arith.constant 7 : i32
    %64 = arith.addi %0, %c7_i32 : i32
    %65 = arith.index_cast %64 : i32 to index
    %66 = memref.load %arg1[%65] : memref<16xi32, #tpu.memory_space<smem>>
    %c7_i32_28 = arith.constant 7 : i32
    %c7_i32_29 = arith.constant 7 : i32
    %c0_i32_30 = arith.constant 0 : i32
    %67 = tpu.memref_slice %arg3[%66, %c0_i32_30] : memref<65x128xf32, #tpu.memory_space<any>> -> memref<1x128xf32, #tpu.memory_space<any>>
    %68 = tpu.memref_squeeze %67 : memref<1x128xf32, #tpu.memory_space<any>> -> memref<128xf32, #tpu.memory_space<any>>
    %c0_i32_31 = arith.constant 0 : i32
    %69 = tpu.memref_slice %arg6[%c7_i32_28, %c0_i32_31] : memref<8x128xf32, #tpu.memory_space<vmem>> -> memref<1x128xf32, #tpu.memory_space<vmem>>
    %70 = tpu.memref_squeeze %69 : memref<1x128xf32, #tpu.memory_space<vmem>> -> memref<128xf32, #tpu.memory_space<vmem>>
    %71 = tpu.memref_slice %arg7[%c7_i32_29] : memref<8x!tpu.dma_semaphore, #tpu.memory_space<semaphore_mem>> -> memref<1x!tpu.dma_semaphore, #tpu.memory_space<semaphore_mem>>
    %72 = tpu.memref_squeeze %71 : memref<1x!tpu.dma_semaphore, #tpu.memory_space<semaphore_mem>> -> memref<!tpu.dma_semaphore, #tpu.memory_space<semaphore_mem>>
    tpu.enqueue_dma source(%68 : memref<128xf32, #tpu.memory_space<any>>) target(%70 : memref<128xf32, #tpu.memory_space<vmem>>) target_semaphore(%72 : memref<!tpu.dma_semaphore, #tpu.memory_space<semaphore_mem>>)
    %c0_i32_32 = arith.constant 0 : i32
    %c0_i32_33 = arith.constant 0 : i32
    %c0_i32_34 = arith.constant 0 : i32
    %c0_i32_35 = arith.constant 0 : i32
    %73 = tpu.memref_slice %arg3[%c0_i32_32, %c0_i32_35] : memref<65x128xf32, #tpu.memory_space<any>> -> memref<1x128xf32, #tpu.memory_space<any>>
    %74 = tpu.memref_squeeze %73 : memref<1x128xf32, #tpu.memory_space<any>> -> memref<128xf32, #tpu.memory_space<any>>
    %c0_i32_36 = arith.constant 0 : i32
    %75 = tpu.memref_slice %arg6[%c0_i32_33, %c0_i32_36] : memref<8x128xf32, #tpu.memory_space<vmem>> -> memref<1x128xf32, #tpu.memory_space<vmem>>
    %76 = tpu.memref_squeeze %75 : memref<1x128xf32, #tpu.memory_space<vmem>> -> memref<128xf32, #tpu.memory_space<vmem>>
    %77 = tpu.memref_slice %arg7[%c0_i32_34] : memref<8x!tpu.dma_semaphore, #tpu.memory_space<semaphore_mem>> -> memref<1x!tpu.dma_semaphore, #tpu.memory_space<semaphore_mem>>
    %78 = tpu.memref_squeeze %77 : memref<1x!tpu.dma_semaphore, #tpu.memory_space<semaphore_mem>> -> memref<!tpu.dma_semaphore, #tpu.memory_space<semaphore_mem>>
    tpu.wait_dma2 semaphore(%78 : memref<!tpu.dma_semaphore, #tpu.memory_space<semaphore_mem>>) src(%74 : memref<128xf32, #tpu.memory_space<any>>) dst(%76 : memref<128xf32, #tpu.memory_space<vmem>>)
    %c0_i32_37 = arith.constant 0 : i32
    %c1_i32_38 = arith.constant 1 : i32
    %c1_i32_39 = arith.constant 1 : i32
    %c0_i32_40 = arith.constant 0 : i32
    %79 = tpu.memref_slice %arg3[%c0_i32_37, %c0_i32_40] : memref<65x128xf32, #tpu.memory_space<any>> -> memref<1x128xf32, #tpu.memory_space<any>>
    %80 = tpu.memref_squeeze %79 : memref<1x128xf32, #tpu.memory_space<any>> -> memref<128xf32, #tpu.memory_space<any>>
    %c0_i32_41 = arith.constant 0 : i32
    %81 = tpu.memref_slice %arg6[%c1_i32_38, %c0_i32_41] : memref<8x128xf32, #tpu.memory_space<vmem>> -> memref<1x128xf32, #tpu.memory_space<vmem>>
    %82 = tpu.memref_squeeze %81 : memref<1x128xf32, #tpu.memory_space<vmem>> -> memref<128xf32, #tpu.memory_space<vmem>>
    %83 = tpu.memref_slice %arg7[%c1_i32_39] : memref<8x!tpu.dma_semaphore, #tpu.memory_space<semaphore_mem>> -> memref<1x!tpu.dma_semaphore, #tpu.memory_space<semaphore_mem>>
    %84 = tpu.memref_squeeze %83 : memref<1x!tpu.dma_semaphore, #tpu.memory_space<semaphore_mem>> -> memref<!tpu.dma_semaphore, #tpu.memory_space<semaphore_mem>>
    tpu.wait_dma2 semaphore(%84 : memref<!tpu.dma_semaphore, #tpu.memory_space<semaphore_mem>>) src(%80 : memref<128xf32, #tpu.memory_space<any>>) dst(%82 : memref<128xf32, #tpu.memory_space<vmem>>)
    %c0_i32_42 = arith.constant 0 : i32
    %c2_i32_43 = arith.constant 2 : i32
    %c2_i32_44 = arith.constant 2 : i32
    %c0_i32_45 = arith.constant 0 : i32
    %85 = tpu.memref_slice %arg3[%c0_i32_42, %c0_i32_45] : memref<65x128xf32, #tpu.memory_space<any>> -> memref<1x128xf32, #tpu.memory_space<any>>
    %86 = tpu.memref_squeeze %85 : memref<1x128xf32, #tpu.memory_space<any>> -> memref<128xf32, #tpu.memory_space<any>>
    %c0_i32_46 = arith.constant 0 : i32
    %87 = tpu.memref_slice %arg6[%c2_i32_43, %c0_i32_46] : memref<8x128xf32, #tpu.memory_space<vmem>> -> memref<1x128xf32, #tpu.memory_space<vmem>>
    %88 = tpu.memref_squeeze %87 : memref<1x128xf32, #tpu.memory_space<vmem>> -> memref<128xf32, #tpu.memory_space<vmem>>
    %89 = tpu.memref_slice %arg7[%c2_i32_44] : memref<8x!tpu.dma_semaphore, #tpu.memory_space<semaphore_mem>> -> memref<1x!tpu.dma_semaphore, #tpu.memory_space<semaphore_mem>>
    %90 = tpu.memref_squeeze %89 : memref<1x!tpu.dma_semaphore, #tpu.memory_space<semaphore_mem>> -> memref<!tpu.dma_semaphore, #tpu.memory_space<semaphore_mem>>
    tpu.wait_dma2 semaphore(%90 : memref<!tpu.dma_semaphore, #tpu.memory_space<semaphore_mem>>) src(%86 : memref<128xf32, #tpu.memory_space<any>>) dst(%88 : memref<128xf32, #tpu.memory_space<vmem>>)
    %c0_i32_47 = arith.constant 0 : i32
    %c3_i32_48 = arith.constant 3 : i32
    %c3_i32_49 = arith.constant 3 : i32
    %c0_i32_50 = arith.constant 0 : i32
    %91 = tpu.memref_slice %arg3[%c0_i32_47, %c0_i32_50] : memref<65x128xf32, #tpu.memory_space<any>> -> memref<1x128xf32, #tpu.memory_space<any>>
    %92 = tpu.memref_squeeze %91 : memref<1x128xf32, #tpu.memory_space<any>> -> memref<128xf32, #tpu.memory_space<any>>
    %c0_i32_51 = arith.constant 0 : i32
    %93 = tpu.memref_slice %arg6[%c3_i32_48, %c0_i32_51] : memref<8x128xf32, #tpu.memory_space<vmem>> -> memref<1x128xf32, #tpu.memory_space<vmem>>
    %94 = tpu.memref_squeeze %93 : memref<1x128xf32, #tpu.memory_space<vmem>> -> memref<128xf32, #tpu.memory_space<vmem>>
    %95 = tpu.memref_slice %arg7[%c3_i32_49] : memref<8x!tpu.dma_semaphore, #tpu.memory_space<semaphore_mem>> -> memref<1x!tpu.dma_semaphore, #tpu.memory_space<semaphore_mem>>
    %96 = tpu.memref_squeeze %95 : memref<1x!tpu.dma_semaphore, #tpu.memory_space<semaphore_mem>> -> memref<!tpu.dma_semaphore, #tpu.memory_space<semaphore_mem>>
    tpu.wait_dma2 semaphore(%96 : memref<!tpu.dma_semaphore, #tpu.memory_space<semaphore_mem>>) src(%92 : memref<128xf32, #tpu.memory_space<any>>) dst(%94 : memref<128xf32, #tpu.memory_space<vmem>>)
    %c0_i32_52 = arith.constant 0 : i32
    %c4_i32_53 = arith.constant 4 : i32
    %c4_i32_54 = arith.constant 4 : i32
    %c0_i32_55 = arith.constant 0 : i32
    %97 = tpu.memref_slice %arg3[%c0_i32_52, %c0_i32_55] : memref<65x128xf32, #tpu.memory_space<any>> -> memref<1x128xf32, #tpu.memory_space<any>>
    %98 = tpu.memref_squeeze %97 : memref<1x128xf32, #tpu.memory_space<any>> -> memref<128xf32, #tpu.memory_space<any>>
    %c0_i32_56 = arith.constant 0 : i32
    %99 = tpu.memref_slice %arg6[%c4_i32_53, %c0_i32_56] : memref<8x128xf32, #tpu.memory_space<vmem>> -> memref<1x128xf32, #tpu.memory_space<vmem>>
    %100 = tpu.memref_squeeze %99 : memref<1x128xf32, #tpu.memory_space<vmem>> -> memref<128xf32, #tpu.memory_space<vmem>>
    %101 = tpu.memref_slice %arg7[%c4_i32_54] : memref<8x!tpu.dma_semaphore, #tpu.memory_space<semaphore_mem>> -> memref<1x!tpu.dma_semaphore, #tpu.memory_space<semaphore_mem>>
    %102 = tpu.memref_squeeze %101 : memref<1x!tpu.dma_semaphore, #tpu.memory_space<semaphore_mem>> -> memref<!tpu.dma_semaphore, #tpu.memory_space<semaphore_mem>>
    tpu.wait_dma2 semaphore(%102 : memref<!tpu.dma_semaphore, #tpu.memory_space<semaphore_mem>>) src(%98 : memref<128xf32, #tpu.memory_space<any>>) dst(%100 : memref<128xf32, #tpu.memory_space<vmem>>)
    %c0_i32_57 = arith.constant 0 : i32
    %c5_i32_58 = arith.constant 5 : i32
    %c5_i32_59 = arith.constant 5 : i32
    %c0_i32_60 = arith.constant 0 : i32
    %103 = tpu.memref_slice %arg3[%c0_i32_57, %c0_i32_60] : memref<65x128xf32, #tpu.memory_space<any>> -> memref<1x128xf32, #tpu.memory_space<any>>
    %104 = tpu.memref_squeeze %103 : memref<1x128xf32, #tpu.memory_space<any>> -> memref<128xf32, #tpu.memory_space<any>>
    %c0_i32_61 = arith.constant 0 : i32
    %105 = tpu.memref_slice %arg6[%c5_i32_58, %c0_i32_61] : memref<8x128xf32, #tpu.memory_space<vmem>> -> memref<1x128xf32, #tpu.memory_space<vmem>>
    %106 = tpu.memref_squeeze %105 : memref<1x128xf32, #tpu.memory_space<vmem>> -> memref<128xf32, #tpu.memory_space<vmem>>
    %107 = tpu.memref_slice %arg7[%c5_i32_59] : memref<8x!tpu.dma_semaphore, #tpu.memory_space<semaphore_mem>> -> memref<1x!tpu.dma_semaphore, #tpu.memory_space<semaphore_mem>>
    %108 = tpu.memref_squeeze %107 : memref<1x!tpu.dma_semaphore, #tpu.memory_space<semaphore_mem>> -> memref<!tpu.dma_semaphore, #tpu.memory_space<semaphore_mem>>
    tpu.wait_dma2 semaphore(%108 : memref<!tpu.dma_semaphore, #tpu.memory_space<semaphore_mem>>) src(%104 : memref<128xf32, #tpu.memory_space<any>>) dst(%106 : memref<128xf32, #tpu.memory_space<vmem>>)
    %c0_i32_62 = arith.constant 0 : i32
    %c6_i32_63 = arith.constant 6 : i32
    %c6_i32_64 = arith.constant 6 : i32
    %c0_i32_65 = arith.constant 0 : i32
    %109 = tpu.memref_slice %arg3[%c0_i32_62, %c0_i32_65] : memref<65x128xf32, #tpu.memory_space<any>> -> memref<1x128xf32, #tpu.memory_space<any>>
    %110 = tpu.memref_squeeze %109 : memref<1x128xf32, #tpu.memory_space<any>> -> memref<128xf32, #tpu.memory_space<any>>
    %c0_i32_66 = arith.constant 0 : i32
    %111 = tpu.memref_slice %arg6[%c6_i32_63, %c0_i32_66] : memref<8x128xf32, #tpu.memory_space<vmem>> -> memref<1x128xf32, #tpu.memory_space<vmem>>
    %112 = tpu.memref_squeeze %111 : memref<1x128xf32, #tpu.memory_space<vmem>> -> memref<128xf32, #tpu.memory_space<vmem>>
    %113 = tpu.memref_slice %arg7[%c6_i32_64] : memref<8x!tpu.dma_semaphore, #tpu.memory_space<semaphore_mem>> -> memref<1x!tpu.dma_semaphore, #tpu.memory_space<semaphore_mem>>
    %114 = tpu.memref_squeeze %113 : memref<1x!tpu.dma_semaphore, #tpu.memory_space<semaphore_mem>> -> memref<!tpu.dma_semaphore, #tpu.memory_space<semaphore_mem>>
    tpu.wait_dma2 semaphore(%114 : memref<!tpu.dma_semaphore, #tpu.memory_space<semaphore_mem>>) src(%110 : memref<128xf32, #tpu.memory_space<any>>) dst(%112 : memref<128xf32, #tpu.memory_space<vmem>>)
    %c0_i32_67 = arith.constant 0 : i32
    %c7_i32_68 = arith.constant 7 : i32
    %c7_i32_69 = arith.constant 7 : i32
    %c0_i32_70 = arith.constant 0 : i32
    %115 = tpu.memref_slice %arg3[%c0_i32_67, %c0_i32_70] : memref<65x128xf32, #tpu.memory_space<any>> -> memref<1x128xf32, #tpu.memory_space<any>>
    %116 = tpu.memref_squeeze %115 : memref<1x128xf32, #tpu.memory_space<any>> -> memref<128xf32, #tpu.memory_space<any>>
    %c0_i32_71 = arith.constant 0 : i32
    %117 = tpu.memref_slice %arg6[%c7_i32_68, %c0_i32_71] : memref<8x128xf32, #tpu.memory_space<vmem>> -> memref<1x128xf32, #tpu.memory_space<vmem>>
    %118 = tpu.memref_squeeze %117 : memref<1x128xf32, #tpu.memory_space<vmem>> -> memref<128xf32, #tpu.memory_space<vmem>>
    %119 = tpu.memref_slice %arg7[%c7_i32_69] : memref<8x!tpu.dma_semaphore, #tpu.memory_space<semaphore_mem>> -> memref<1x!tpu.dma_semaphore, #tpu.memory_space<semaphore_mem>>
    %120 = tpu.memref_squeeze %119 : memref<1x!tpu.dma_semaphore, #tpu.memory_space<semaphore_mem>> -> memref<!tpu.dma_semaphore, #tpu.memory_space<semaphore_mem>>
    tpu.wait_dma2 semaphore(%120 : memref<!tpu.dma_semaphore, #tpu.memory_space<semaphore_mem>>) src(%116 : memref<128xf32, #tpu.memory_space<any>>) dst(%118 : memref<128xf32, #tpu.memory_space<vmem>>)
    %c0 = arith.constant 0 : index
    %c0_72 = arith.constant 0 : index
    %121 = vector.load %arg6[%c0, %c0_72] : memref<8x128xf32, #tpu.memory_space<vmem>>, vector<8x128xf32>
    %c0_73 = arith.constant 0 : index
    %c0_74 = arith.constant 0 : index
    %122 = vector.load %arg4[%c0_73, %c0_74] : memref<8x128xf32, #tpu.memory_space<vmem>>, vector<8x128xf32>
    tpu.vector_store %arg4[%c0_73, %c0_74], %121 {strides = array<i32>} : memref<8x128xf32, #tpu.memory_space<vmem>>, vector<8x128xf32>,
    %cst = arith.constant dense<0xFF800000> : vector<8xf32>
    %123 = vector.multi_reduction <maximumf>, %121, %cst [1] : vector<8x128xf32> to vector<8xf32>
    %124 = vector.shape_cast %123 : vector<8xf32> to vector<8x1xf32>
    %125 = vector.broadcast %124 : vector<8x1xf32> to vector<8x128xf32>
    %126 = arith.subf %121, %125 : vector<8x128xf32>
    %127 = math.exp %126 : vector<8x128xf32>
    %cst_75 = arith.constant dense<0.000000e+00> : vector<8xf32>
    %128 = vector.multi_reduction <add>, %127, %cst_75 [1] : vector<8x128xf32> to vector<8xf32>
    %129 = vector.shape_cast %128 : vector<8xf32> to vector<8x1xf32>
    %130 = math.log %129 : vector<8x1xf32>
    %131 = arith.addf %130, %124 : vector<8x1xf32>
    %132 = tpu.iota {dimensions = array<i32: 1>} : vector<8x128xi32>
    %c0_76 = arith.constant 0 : index
    %c0_77 = arith.constant 0 : index
    %133 = vector.load %arg2[%c0_76, %c0_77] : memref<8x1xi32, #tpu.memory_space<vmem>>, vector<8x1xi32>
    %134 = vector.broadcast %133 : vector<8x1xi32> to vector<8x128xi32>
    %135 = arith.cmpi eq, %132, %134 : vector<8x128xi32>
    %cst_78 = arith.constant 0.000000e+00 : f32
    %136 = vector.broadcast %cst_78 : f32 to vector<8x128xf32>
    %137 = arith.select %135, %121, %136 : vector<8x128xi1>, vector<8x128xf32>
    %cst_79 = arith.constant dense<0.000000e+00> : vector<8xf32>
    %138 = vector.multi_reduction <add>, %137, %cst_79 [1] : vector<8x128xf32> to vector<8xf32>
    %139 = vector.shape_cast %138 : vector<8xf32> to vector<8x1xf32>
    %140 = tpu.iota {dimensions = array<i32: 0>} : vector<8x1xi32>
    %141 = vector.broadcast %0 : i32 to vector<8x1xi32>
    %142 = arith.addi %141, %140 : vector<8x1xi32>
    %c16_i32 = arith.constant 16 : i32
    %143 = vector.broadcast %c16_i32 : i32 to vector<8x1xi32>
    %144 = arith.cmpi slt, %142, %143 : vector<8x1xi32>
    %145 = arith.subf %131, %139 : vector<8x1xf32>
    %cst_80 = arith.constant 0.000000e+00 : f32
    %146 = vector.broadcast %cst_80 : f32 to vector<8x1xf32>
    %147 = arith.select %144, %145, %146 : vector<8x1xi1>, vector<8x1xf32>
    %c0_i32_81 = arith.constant 0 : i32
    %148 = arith.cmpi eq, %arg0, %c0_i32_81 : i32
    %149 = arith.extui %148 : i1 to i32
    %c0_i32_82 = arith.constant 0 : i32
    %150 = arith.cmpi ne, %149, %c0_i32_82 : i32
    scf.if %150 {
      %cst_90 = arith.constant 0.000000e+00 : f32
      %159 = vector.broadcast %cst_90 : f32 to vector<1x1xf32>
      %c0_91 = arith.constant 0 : index
      %c0_92 = arith.constant 0 : index
      %160 = vector.load %arg5[%c0_91, %c0_92] : memref<1x1xf32, #tpu.memory_space<vmem>>, vector<1x1xf32>
      tpu.vector_store %arg5[%c0_91, %c0_92], %159 {strides = array<i32>} : memref<1x1xf32, #tpu.memory_space<vmem>>, vector<1x1xf32>,
    } else {
    }
    %c0_83 = arith.constant 0 : index
    %c0_84 = arith.constant 0 : index
    %151 = vector.load %arg5[%c0_83, %c0_84] : memref<1x1xf32, #tpu.memory_space<vmem>>, vector<1x1xf32>
    %cst_85 = arith.constant dense<0.000000e+00> : vector<1xf32>
    %152 = vector.multi_reduction <add>, %147, %cst_85 [0] : vector<8x1xf32> to vector<1xf32>
    %153 = vector.shape_cast %152 : vector<1xf32> to vector<1x1xf32>
    %154 = arith.addf %151, %153 : vector<1x1xf32>
    %c0_86 = arith.constant 0 : index
    %c0_87 = arith.constant 0 : index
    %155 = vector.load %arg5[%c0_86, %c0_87] : memref<1x1xf32, #tpu.memory_space<vmem>>, vector<1x1xf32>
    tpu.vector_store %arg5[%c0_86, %c0_87], %154 {strides = array<i32>} : memref<1x1xf32, #tpu.memory_space<vmem>>, vector<1x1xf32>,
    %c1_i32_88 = arith.constant 1 : i32
    %156 = arith.cmpi eq, %arg0, %c1_i32_88 : i32
    %157 = arith.extui %156 : i1 to i32
    %c0_i32_89 = arith.constant 0 : i32
    %158 = arith.cmpi ne, %157, %c0_i32_89 : i32
    scf.if %158 {
      %c0_90 = arith.constant 0 : index
      %c0_91 = arith.constant 0 : index
      %159 = vector.load %arg5[%c0_90, %c0_91] : memref<1x1xf32, #tpu.memory_space<vmem>>, vector<1x1xf32>
      %cst_92 = arith.constant 6.250000e-02 : f32
      %160 = vector.broadcast %cst_92 : f32 to vector<1x1xf32>
      %161 = arith.mulf %159, %160 : vector<1x1xf32>
      %c0_93 = arith.constant 0 : index
      %c0_94 = arith.constant 0 : index
      %162 = vector.load %arg5[%c0_93, %c0_94] : memref<1x1xf32, #tpu.memory_space<vmem>>, vector<1x1xf32>
      tpu.vector_store %arg5[%c0_93, %c0_94], %161 {strides = array<i32>} : memref<1x1xf32, #tpu.memory_space<vmem>>, vector<1x1xf32>,
    } else {
    }
    return
  }
  func.func @transform_0(%arg0: i32, %arg1: memref<16xi32, #tpu.memory_space<smem>>) -> (i32, i32) {
    %c0_i32 = arith.constant 0 : i32
    %c0_i32_0 = arith.constant 0 : i32
    return %arg0, %c0_i32 : i32, i32
  }
  func.func @transform_2(%arg0: i32, %arg1: memref<16xi32, #tpu.memory_space<smem>>) -> (i32, i32) {
    %c0_i32 = arith.constant 0 : i32
    %c0_i32_0 = arith.constant 0 : i32
    return %arg0, %c0_i32 : i32, i32
  }
  func.func @transform_3(%arg0: i32, %arg1: memref<16xi32, #tpu.memory_space<smem>>) -> (i32, i32) {
    %c0_i32 = arith.constant 0 : i32
    %c0_i32_0 = arith.constant 0 : i32
    %c0_i32_1 = arith.constant 0 : i32
    return %c0_i32, %c0_i32_0 : i32, i32
  }
}

</mosaic_0001>

<bundles_post_ra>
// kernel: tpu_custom_call.1
= control target key start
LH: loop header
LB: loop body
LE: loop exit
PB: predicated region body
PF: predicated region fallthrough
CT: control target
= control target key end

     0   :  { %s1241_s0 = inlined_call_operand.vmem [shape: s32[16], index: 0, kind: input, shape index: {}]   ;;  %s1242_s1 = inlined_call_operand.vmem [shape: s32[16,1], index: 1, kind: input, shape index: {}]   ;;  %s1243_s2 = inlined_call_operand.hbm [shape: f32[65,128], index: 2, kind: input, shape index: {}]   ;;  %s1244_s3 = inlined_call_operand.hbm [shape: f32[16,128], index: 3, kind: output, shape index: {0}]   ;;  %s1245_s4 = inlined_call_operand.hbm [shape: f32[1,1], index: 4, kind: output, shape index: {1}]  }
   0x1   :  { %1252 = sst [smem:[#allocation43_spill]] %s1242_s1  ;;  %s10_s17 = sshll.u32 %s1241_s0, 4  ;;  %s11_s17 = int_to_ptr.vmem [resolvable:$true] %s10_s17 }
   0x2   :  { %s607_s18 = scalar_lea.vmem %s11_s17, 16  ;;  %p612_p1 = scmp.lt.s32.totalorder %s11_s17, %s11_s17 }
   0x3   :  { %p608_p0 = scmp.ne.s32.totalorder %s11_s17, %s607_s18  ;;  %p613_p2 = scmp.lt.s32.totalorder %s607_s18, %s607_s18 }
   0x5   :  { %p614_p3 = por %p613_p2, %p612_p1 }
   0x7   :  { %p615_p4 = pnand %p614_p3, %p608_p0 }
   0x9   :  { %618 = shalt.err (!%p615_p4)  }
   0xa   :  { %s923_s19 = smov [#allocation5]  }
   0xb   :  { %13 = dma.vmem_to_smem %s11_s17, 16, %s923_s19, [#allocation4] }
   0xc   :  { %881 = dma.done.wait [#allocation4], 16 }
   0xd   :  { %882 = vsyncadd [#allocation4], 4294967280 }
   0xe   :  { %15 = sfence }
   0xf   :  { %16 = vsyncpa [#allocation7], 0 }
  0x10   :  { %18 = vsyncpa [#allocation7 + $0x1], 0 }
  0x11   :  { %19 = vsyncpa [#allocation9], 0  ;;  %s964_s20 = smov 0   ;;  %s966_s21 = smov 0  }
  0x12   :  { %s968_s0 = smov 0   ;;  %s970_s22 = smov 0  }
  0x13 LB: > { %1253 = sst [smem:[#allocation39_spill]] %s917_s0  ;;  %s985_s23 = sadd.s32 4294967295, %s921_s22   ;;  %s921_s22 = sphi %s970_s22, %s1267_s22   ;;  %s917_s0 = sphi %s968_s0, %s1269_s0   ;;  %s913_s21 = sphi %s966_s21, %s1271_s21   ;;  %s909_s20 = sphi %s964_s20, %s1270_s20  }
  0x14   : > { %s514_s24 = sadd.s32 4294967294, %s921_s22   ;;  %s989_s25 = sadd.s32 1, %s921_s22  }
  0x15   : > { %1254 = sst [smem:[#allocation40_spill]] %s989_s25  ;;  %s58_s26 = sadd.s32 1, %s917_s0 }
  0x16   : > { %s55_s27 = ssub.s32 %s921_s22, %s989_s25  ;;  %p68_p5 = scmp.ne.s32.totalorder %s917_s0, %s913_s21 }
  0x17   : > { %p56_p6 = scmp.eq.s32.totalorder %s55_s27, 0  ;;  %p1247_p7 = scmp.eq.s32.totalorder %s985_s23, 1 }
  0x18   : > { %p74_p8 = scmp.ne.s32.totalorder %s913_s21, %s909_s20  ;;  %p75_p9 = scmp.eq.s32.totalorder %s514_s24, 1 }
  0x19   : > { %s1000_s28 = scalar_select %p56_p6, %s917_s0, %s58_s26  }
  0x1a   : > { %p1004_p10 = por %p1247_p7, %p68_p5  ;;  %p1008_p11 = por %p75_p9, %p74_p8 }
  0x1b   : > { %1255 = sst [smem:[#allocation41_spill]] %s1000_s28  ;;  %p517_p12 = scmp.ge.s32.totalorder %s921_s22, 1 }
  0x1c   : > { %s1257_s30 = scalar_select %p1008_p11, 1, 0 }
  0x1d   : > { %p121_p13 = scmp.lt.s32.totalorder %s921_s22, 3 }
  0x1e   : > { %1258 = sst [smem:[#allocation42_spill]] %s1257_s30 }
  0x1f   : > { %p122_p0 = pnand %p517_p12, %p121_p13 }
  0x20   : > { %s1246_s5 = sand.u32 (!%p122_p0), 1, %s913_s21   ;;  %p142_p1 = scmp.lt.s32.totalorder (!%p122_p0), %s985_s23, 1 }
  0x21   : > { %125 = sbr.rel (%p122_p0) target bundleno = 633 (0x279), region = 24  ;;  %s1018_s6 = sshll.u32 (!%p122_p0), %s1246_s5, 3 }
  0x22   : > { %s1021_s7 = sshll.u32 (!%p122_p0), %s985_s23, 3  ;;  %s924_s12 = smov (!%p122_p0), [#allocation2]  }
  0x23   : > { %s147_s8 = sld [smem:[#allocation5 + %s1021_s7]] (!%p122_p0)  ;;  %s161_s10 = sadd.s32 (!%p122_p0), 1, %s1021_s7 }
  0x24   : > { %s157_s13 = sshll.u32 (!%p122_p0), %s924_s12, 4  ;;  %s1259_s1 = sld [smem:[#allocation43_spill]] (!%p122_p0)  ;;  %s1031_s13 = int_to_ptr.vmem [resolvable:$true] %s157_s13 }
  0x25   : > { %s1033_s17 = sld [smem:[#allocation5 + %s161_s10]] (!%p122_p0)  ;;  %s925_s19 = smov (!%p122_p0), [#allocation2 + $0x1]  }
  0x26   : > { %s174_s24 = sshll.u32 (!%p122_p0), %s925_s19, 4  ;;  %s1038_s24 = int_to_ptr.vmem [resolvable:$true] %s174_s24 }
  0x28   : > { %s143_s9 = scalar_select %p142_p1, %s985_s23, 1 }
  0x29   : > { %s521_s18 = sshll.u32 %s147_s8, 4 }
  0x2a   : > { %s519_s11 = sshll.u32 %s143_s9, 3  ;;  %s149_s5 = scalar_lea.hbm %s1243_s2, %s521_s18 }
  0x2b   : > { %s1029_s16 = scalar_lea.vmem %s1259_s1, %s519_s11  ;;  %s619_s9 = scalar_lea.hbm %s149_s5, 16 }
  0x2c   : > { %p620_p2 = scmp.ne.s32.totalorder %s149_s5, %s619_s9  ;;  %s1043_s11 = scalar_lea.hbm %s1243_s2, 1152 }
  0x2d   : > { %p622_p3 = scmp.lt.u32.totalorder %s149_s5, %s1243_s2  ;;  %p623_p4 = scmp.lt.u32.totalorder %s1043_s11, %s619_s9 }
  0x2e   : > { %p625_p6 = scmp.lt.u32.totalorder %s619_s9, %s149_s5 }
  0x2f   : > { %p624_p5 = por %p623_p4, %p622_p3 }
  0x31   : > { %p626_p8 = por %p625_p6, %p624_p5 }
  0x33   : > { %p627_p9 = pnand %p626_p8, %p620_p2 }
  0x35   : > { %630 = shalt.err (!%p627_p9)  }
  0x36   : > { %s631_s8 = scalar_lea.vmem %s1031_s13, 16  ;;  %s1052_s28 = scalar_lea.vmem %s1031_s13, 128 }
  0x37   : > { %p632_p12 = scmp.ne.s32.totalorder %s1031_s13, %s631_s8  ;;  %p636_p13 = scmp.lt.s32.totalorder %s1031_s13, %s1031_s13 }
  0x38   : > { %p637_p0 = scmp.lt.s32.totalorder %s1052_s28, %s631_s8 }
  0x3a   : > { %p638_p1 = por %p637_p0, %p636_p13 }
  0x3c   : > { %p639_p7 = pnand %p638_p1, %p632_p12 }
  0x3e   : > { %642 = shalt.err (!%p639_p7)  }
  0x3f   : > { %160 = dma.hbm_to_vmem [thread:$0]  %s149_s5, 16, %s1031_s13, [#allocation3] }
  0x40   : > { %s178_s10 = sadd.s32 2, %s1021_s7  ;;  %s926_s19 = smov [#allocation2 + $0x2]  }
  0x41   : > { %s1059_s18 = sld [smem:[#allocation5 + %s178_s10]]  ;;  %s191_s26 = sshll.u32 %s926_s19, 4  ;;  %s1062_s26 = int_to_ptr.vmem [resolvable:$true] %s191_s26 }
  0x42   : > { %s522_s27 = sshll.u32 %s1033_s17, 4  ;;  %s195_s15 = sadd.s32 3, %s1021_s7 }
  0x43   : > { %s164_s14 = scalar_lea.hbm %s1243_s2, %s522_s27 }
  0x44   : > { %s643_s8 = scalar_lea.hbm %s164_s14, 16  ;;  %p646_p2 = scmp.lt.u32.totalorder %s164_s14, %s1243_s2 }
  0x45   : > { %p644_p7 = scmp.ne.s32.totalorder %s164_s14, %s643_s8  ;;  %p647_p3 = scmp.lt.u32.totalorder %s1043_s11, %s643_s8 }
  0x46   : > { %p649_p5 = scmp.lt.u32.totalorder %s643_s8, %s164_s14 }
  0x47   : > { %p648_p4 = por %p647_p3, %p646_p2 }
  0x49   : > { %p650_p6 = por %p649_p5, %p648_p4 }
  0x4b   : > { %p651_p8 = pnand %p650_p6, %p644_p7 }
  0x4d   : > { %654 = shalt.err (!%p651_p8)  }
  0x4e   : > { %s655_s5 = scalar_lea.vmem %s1038_s24, 16  ;;  %p660_p12 = scmp.lt.s32.totalorder %s1038_s24, %s1031_s13 }
  0x4f   : > { %p656_p9 = scmp.ne.s32.totalorder %s1038_s24, %s655_s5  ;;  %p661_p13 = scmp.lt.s32.totalorder %s1052_s28, %s655_s5 }
  0x51   : > { %p662_p0 = por %p661_p13, %p660_p12 }
  0x53   : > { %p663_p1 = pnand %p662_p0, %p656_p9 }
  0x55   : > { %666 = shalt.err (!%p663_p1)  }
  0x56   : > { %177 = dma.hbm_to_vmem [thread:$0]  %s164_s14, 16, %s1038_s24, [#allocation3 + $0x1] }
  0x57   : > { %s1078_s1 = sld [smem:[#allocation5 + %s195_s15]]  ;;  %s927_s0 = smov [#allocation2 + $0x3]  }
  0x58   : > { %s208_s17 = sshll.u32 %s927_s0, 4  ;;  %s212_s10 = sadd.s32 4, %s1021_s7  ;;  %s1082_s17 = int_to_ptr.vmem [resolvable:$true] %s208_s17 }
  0x59   : > { %s523_s19 = sshll.u32 %s1059_s18, 4  ;;  %s1087_s8 = sld [smem:[#allocation5 + %s212_s10]] }
  0x5a   : > { %s181_s12 = scalar_lea.hbm %s1243_s2, %s523_s19 }
  0x5b   : > { %s667_s5 = scalar_lea.hbm %s181_s12, 16  ;;  %p670_p2 = scmp.lt.u32.totalorder %s181_s12, %s1243_s2 }
  0x5c   : > { %p668_p7 = scmp.ne.s32.totalorder %s181_s12, %s667_s5  ;;  %p671_p3 = scmp.lt.u32.totalorder %s1043_s11, %s667_s5 }
  0x5d   : > { %p673_p5 = scmp.lt.u32.totalorder %s667_s5, %s181_s12 }
  0x5e   : > { %p672_p4 = por %p671_p3, %p670_p2 }
  0x60   : > { %p674_p6 = por %p673_p5, %p672_p4 }
  0x62   : > { %p675_p8 = pnand %p674_p6, %p668_p7 }
  0x64   : > { %678 = shalt.err (!%p675_p8)  }
  0x65   : > { %s679_s24 = scalar_lea.vmem %s1062_s26, 16  ;;  %p684_p12 = scmp.lt.s32.totalorder %s1062_s26, %s1031_s13 }
  0x66   : > { %p680_p9 = scmp.ne.s32.totalorder %s1062_s26, %s679_s24  ;;  %p685_p13 = scmp.lt.s32.totalorder %s1052_s28, %s679_s24 }
  0x68   : > { %p686_p0 = por %p685_p13, %p684_p12 }
  0x6a   : > { %p687_p1 = pnand %p686_p0, %p680_p9 }
  0x6c   : > { %690 = shalt.err (!%p687_p1)  }
  0x6d   : > { %194 = dma.hbm_to_vmem [thread:$0]  %s181_s12, 16, %s1062_s26, [#allocation3 + $0x2] }
  0x6e   : > { %s229_s25 = sadd.s32 5, %s1021_s7  ;;  %s524_s30 = sshll.u32 %s1078_s1, 4 }
  0x6f   : > { %s928_s18 = smov [#allocation2 + $0x4]   ;;  %s198_s10 = scalar_lea.hbm %s1243_s2, %s524_s30 }
  0x70   : > { %s225_s14 = sshll.u32 %s928_s18, 4  ;;  %s691_s19 = scalar_lea.hbm %s198_s10, 16  ;;  %s1104_s14 = int_to_ptr.vmem [resolvable:$true] %s225_s14 }
  0x71   : > { %p692_p7 = scmp.ne.s32.totalorder %s198_s10, %s691_s19  ;;  %p694_p2 = scmp.lt.u32.totalorder %s198_s10, %s1243_s2 }
  0x72   : > { %p695_p3 = scmp.lt.u32.totalorder %s1043_s11, %s691_s19  ;;  %p697_p5 = scmp.lt.u32.totalorder %s691_s19, %s198_s10 }
  0x74   : > { %p696_p4 = por %p695_p3, %p694_p2 }
  0x76   : > { %p698_p6 = por %p697_p5, %p696_p4 }
  0x78   : > { %p699_p8 = pnand %p698_p6, %p692_p7 }
  0x7a   : > { %702 = shalt.err (!%p699_p8)  }
  0x7b   : > { %s703_s26 = scalar_lea.vmem %s1082_s17, 16  ;;  %p708_p12 = scmp.lt.s32.totalorder %s1082_s17, %s1031_s13 }
  0x7c   : > { %p704_p9 = scmp.ne.s32.totalorder %s1082_s17, %s703_s26  ;;  %p709_p13 = scmp.lt.s32.totalorder %s1052_s28, %s703_s26 }
  0x7e   : > { %p710_p0 = por %p709_p13, %p708_p12 }
  0x80   : > { %p711_p1 = pnand %p710_p0, %p704_p9 }
  0x82   : > { %714 = shalt.err (!%p711_p1)  }
  0x83   : > { %211 = dma.hbm_to_vmem [thread:$0]  %s198_s10, 16, %s1082_s17, [#allocation3 + $0x3] }
  0x84   : > { %s525_s1 = sshll.u32 %s1087_s8, 4  ;;  %s1117_s12 = sld [smem:[#allocation5 + %s229_s25]] }
  0x85   : > { %s215_s30 = scalar_lea.hbm %s1243_s2, %s525_s1 }
  0x86   : > { %s715_s18 = scalar_lea.hbm %s215_s30, 16  ;;  %p718_p2 = scmp.lt.u32.totalorder %s215_s30, %s1243_s2 }
  0x87   : > { %p716_p7 = scmp.ne.s32.totalorder %s215_s30, %s715_s18  ;;  %p719_p3 = scmp.lt.u32.totalorder %s1043_s11, %s715_s18 }
  0x88   : > { %p721_p5 = scmp.lt.u32.totalorder %s715_s18, %s215_s30 }
  0x89   : > { %p720_p4 = por %p719_p3, %p718_p2 }
  0x8b   : > { %p722_p6 = por %p721_p5, %p720_p4 }
  0x8d   : > { %p723_p8 = pnand %p722_p6, %p716_p7 }
  0x8f   : > { %726 = shalt.err (!%p723_p8)  }
  0x90   : > { %s727_s17 = scalar_lea.vmem %s1104_s14, 16  ;;  %p732_p12 = scmp.lt.s32.totalorder %s1104_s14, %s1031_s13 }
  0x91   : > { %p728_p9 = scmp.ne.s32.totalorder %s1104_s14, %s727_s17  ;;  %p733_p13 = scmp.lt.s32.totalorder %s1052_s28, %s727_s17 }
  0x93   : > { %p734_p0 = por %p733_p13, %p732_p12 }
  0x95   : > { %p735_p1 = pnand %p734_p0, %p728_p9 }
  0x97   : > { %738 = shalt.err (!%p735_p1)  }
  0x98   : > { %228 = dma.hbm_to_vmem [thread:$0]  %s215_s30, 16, %s1104_s14, [#allocation3 + $0x4] }
  0x99   : > { %s929_s8 = smov [#allocation2 + $0x5]   ;;  %s246_s10 = sadd.s32 6, %s1021_s7 }
  0x9a   : > { %s242_s25 = sshll.u32 %s929_s8, 4  ;;  %s247_s19 = sld [smem:[#allocation5 + %s246_s10]]  ;;  %s243_s25 = int_to_ptr.vmem [resolvable:$true] %s242_s25 }
  0x9b   : > { %s263_s27 = sadd.s32 7, %s1021_s7  ;;  %s526_s9 = sshll.u32 %s1117_s12, 4 }
  0x9c   : > { %s930_s26 = smov [#allocation2 + $0x6]   ;;  %s232_s18 = scalar_lea.hbm %s1243_s2, %s526_s9 }
  0x9d   : > { %s259_s1 = sshll.u32 %s930_s26, 4  ;;  %s739_s15 = scalar_lea.hbm %s232_s18, 16  ;;  %s1138_s1 = int_to_ptr.vmem [resolvable:$true] %s259_s1 }
  0x9e   : > { %p740_p7 = scmp.ne.s32.totalorder %s232_s18, %s739_s15  ;;  %p742_p2 = scmp.lt.u32.totalorder %s232_s18, %s1243_s2 }
  0x9f   : > { %p743_p3 = scmp.lt.u32.totalorder %s1043_s11, %s739_s15  ;;  %p745_p5 = scmp.lt.u32.totalorder %s739_s15, %s232_s18 }
  0xa1   : > { %p744_p4 = por %p743_p3, %p742_p2 }
  0xa3   : > { %p746_p6 = por %p745_p5, %p744_p4 }
  0xa5   : > { %p747_p8 = pnand %p746_p6, %p740_p7 }
  0xa7   : > { %750 = shalt.err (!%p747_p8)  }
  0xa8   : > { %s751_s14 = scalar_lea.vmem %s243_s25, 16  ;;  %p756_p12 = scmp.lt.s32.totalorder %s243_s25, %s1031_s13 }
  0xa9   : > { %p752_p9 = scmp.ne.s32.totalorder %s243_s25, %s751_s14  ;;  %p757_p13 = scmp.lt.s32.totalorder %s1052_s28, %s751_s14 }
  0xab   : > { %p758_p0 = por %p757_p13, %p756_p12 }
  0xad   : > { %p759_p1 = pnand %p758_p0, %p752_p9 }
  0xaf   : > { %762 = shalt.err (!%p759_p1)  }
  0xb0   : > { %245 = dma.hbm_to_vmem [thread:$0]  %s232_s18, 16, %s243_s25, [#allocation3 + $0x5] }
  0xb1   : > { %s264_s12 = sld [smem:[#allocation5 + %s263_s27]]  ;;  %s527_s30 = sshll.u32 %s247_s19, 4 }
  0xb2   : > { %s249_s9 = scalar_lea.hbm %s1243_s2, %s527_s30  ;;  %s931_s26 = smov [#allocation2 + $0x7]  }
  0xb3   : > { %s276_s5 = sshll.u32 %s931_s26, 4  ;;  %s763_s24 = scalar_lea.hbm %s249_s9, 16  ;;  %s277_s5 = int_to_ptr.vmem [resolvable:$true] %s276_s5 }
  0xb4   : > { %p764_p7 = scmp.ne.s32.totalorder %s249_s9, %s763_s24  ;;  %p766_p2 = scmp.lt.u32.totalorder %s249_s9, %s1243_s2 }
  0xb5   : > { %p767_p3 = scmp.lt.u32.totalorder %s1043_s11, %s763_s24  ;;  %p769_p5 = scmp.lt.u32.totalorder %s763_s24, %s249_s9 }
  0xb7   : > { %p768_p4 = por %p767_p3, %p766_p2 }
  0xb9   : > { %p770_p6 = por %p769_p5, %p768_p4 }
  0xbb   : > { %p771_p8 = pnand %p770_p6, %p764_p7 }
  0xbd   : > { %774 = shalt.err (!%p771_p8)  }
  0xbe   : > { %s775_s25 = scalar_lea.vmem %s1138_s1, 16  ;;  %p780_p12 = scmp.lt.s32.totalorder %s1138_s1, %s1031_s13 }
  0xbf   : > { %p776_p9 = scmp.ne.s32.totalorder %s1138_s1, %s775_s25  ;;  %p781_p13 = scmp.lt.s32.totalorder %s1052_s28, %s775_s25 }
  0xc1   : > { %p782_p0 = por %p781_p13, %p780_p12 }
  0xc3   : > { %p783_p1 = pnand %p782_p0, %p776_p9 }
  0xc5   : > { %786 = shalt.err (!%p783_p1)  }
  0xc6   : > { %262 = dma.hbm_to_vmem [thread:$0]  %s249_s9, 16, %s1138_s1, [#allocation3 + $0x6] }
  0xc7   : > { %s528_s19 = sshll.u32 %s264_s12, 4 }
  0xc8   : > { %s266_s17 = scalar_lea.hbm %s1243_s2, %s528_s19 }
  0xc9   : > { %s787_s14 = scalar_lea.hbm %s266_s17, 16  ;;  %p790_p2 = scmp.lt.u32.totalorder %s266_s17, %s1243_s2 }
  0xca   : > { %p788_p7 = scmp.ne.s32.totalorder %s266_s17, %s787_s14  ;;  %p791_p3 = scmp.lt.u32.totalorder %s1043_s11, %s787_s14 }
  0xcb   : > { %p793_p5 = scmp.lt.u32.totalorder %s787_s14, %s266_s17 }
  0xcc   : > { %p792_p4 = por %p791_p3, %p790_p2 }
  0xce   : > { %p794_p6 = por %p793_p5, %p792_p4 }
  0xd0   : > { %p795_p8 = pnand %p794_p6, %p788_p7 }
  0xd2   : > { %798 = shalt.err (!%p795_p8)  }
  0xd3   : > { %s799_s10 = scalar_lea.vmem %s277_s5, 16  ;;  %p804_p12 = scmp.lt.s32.totalorder %s277_s5, %s1031_s13 }
  0xd4   : > { %p800_p9 = scmp.ne.s32.totalorder %s277_s5, %s799_s10  ;;  %p805_p13 = scmp.lt.s32.totalorder %s1052_s28, %s799_s10 }
  0xd6   : > { %p806_p0 = por %p805_p13, %p804_p12 }
  0xd8   : > { %p807_p1 = pnand %p806_p0, %p800_p9 }
  0xda   : > { %810 = shalt.err (!%p807_p1)  }
  0xdb   : > { %279 = dma.hbm_to_vmem [thread:$0]  %s266_s17, 16, %s277_s5, [#allocation3 + $0x7] }
  0xdc   : > { %s139_s1 = scalar_lea.vmem [#allocation6], %s1018_s6 }
  0xdd   : > { %883 = dma.done.wait [#allocation3], 16 }
  0xde   : > { %884 = vsyncadd [#allocation3], 4294967280 }
  0xdf   : > { %885 = dma.done.wait [#allocation3 + $0x1], 16 }
  0xe0   : > { %886 = vsyncadd [#allocation3 + $0x1], 4294967280 }
  0xe1   : > { %887 = dma.done.wait [#allocation3 + $0x2], 16 }
  0xe2   : > { %888 = vsyncadd [#allocation3 + $0x2], 4294967280 }
  0xe3   : > { %889 = dma.done.wait [#allocation3 + $0x3], 16 }
  0xe4   : > { %890 = vsyncadd [#allocation3 + $0x3], 4294967280 }
  0xe5   : > { %891 = dma.done.wait [#allocation3 + $0x4], 16 }
  0xe6   : > { %892 = vsyncadd [#allocation3 + $0x4], 4294967280 }
  0xe7   : > { %893 = dma.done.wait [#allocation3 + $0x5], 16 }
  0xe8   : > { %894 = vsyncadd [#allocation3 + $0x5], 4294967280 }
  0xe9   : > { %895 = dma.done.wait [#allocation3 + $0x6], 16 }
  0xea   : > { %896 = vsyncadd [#allocation3 + $0x6], 4294967280 }
  0xeb   : > { %897 = dma.done.wait [#allocation3 + $0x7], 16 }
  0xec   : > { %898 = vsyncadd [#allocation3 + $0x7], 4294967280  ;;  %v932_v0 = vmov 0   ;;  %v296_v1 = vld [vmem:[#allocation2] sm:$0xff]  ;;  %v308_v6 = vlaneseq  ;;  %v320_v13 = vstv %s1021_s7  ;;  %p529_p7 = scmp.ne.s32.totalorder %s985_s23, 0 }
  0xed   : > { %602 = vset.pattern.permute.xlu0 %v932_v0  ;;  %297 = vst [vmem:[%s139_s1] sm:$0xff] %v296_v1  ;;  %v310_v2 = vld [vmem:[%s1029_s16] sm:$0xff]  ;;  %vm329_vm2 = vcmask (!%p529_p7), 0   ;;  %v933_v21 = vmov (!%p529_p7), 0.0  }
  0xee   : > { %298 = vmax.xlane.f32.xlu0 %v296_v1  ;;  %v309_v7 = vand.u32 127, %v308_v6  ;;  %v319_v12 = vshrl.u32 %v308_v6, 7  ;;  %330 = vst.msk [vmem:[#allocation8] sm:$0x1] (!%p529_p7), %vm329_vm2, %v933_v21 }
  0xf0   : > { %v321_v15 = vadd.s32 %v320_v13, %v319_v12 }
  0xf2   : > { %vm322_vm1 = vcmp.lt.s32.totalorder %v321_v15, 16 }
 0x104   : > { %312 = vperm.xlu0 %602, %v310_v2  }
 0x17b   : > { %v299_v3 = vpop.xlane.xlu0 %298 }
 0x17c   : > { %v300_v4 = vsub.f32 %v296_v1, %v299_v3 }
 0x17e   : > { %v301_v5 = vmul.f32 1.442695, %v300_v4 }
 0x180   : > { %603 = vpow2.f32 %v301_v5 }
 0x183   : > { %v313_v8 = vpop.permute.xlu0 %312 }
 0x184   : > { %vm314_vm0 = vcmp.eq.s32.totalorder %v309_v7, %v313_v8 }
 0x185   : > { %v315_v10 = vsel %vm314_vm0, %v296_v1, 0.0 }
 0x18a   : > { %v604_v9 = vpop.eup %603 }
 0x18b   : > { %303 = vadd.xlane.f32.xlu1 %v604_v9 }
 0x18f   : > { %316 = vadd.xlane.f32.xlu1 %v315_v10 }
 0x218   : > { %v304_v11 = vpop.xlane.xlu1 %303 }
 0x219   : > { %605 = vlog2.f32 %v304_v11 }
 0x21c   : > { %v317_v17 = vpop.xlane.xlu1 %316 }
 0x223   : > { %v606_v14 = vpop.eup %605 }
 0x224   : > { %v306_v16 = vmul.f32 0.6931472, %v606_v14  ;;  %328 = sbr.rel (%p529_p7) target bundleno = 555 (0x22b), region = 60 }
 0x226   : > { %v307_v18 = vadd.f32 %v306_v16, %v299_v3 }
 0x228   : > { %v323_v19 = vsub.f32 %v307_v18, %v317_v17 }
 0x22a   : > { %v324_v20 = vsel %vm322_vm1, %v323_v19, 0.0 }
 0x22b PF: > { %v332_v22 = vrot.slane %v324_v20, 4  ;;  %v331_v27 = vld [vmem:[#allocation8] sm:$0x1]  ;;  %vm339_vm3 = vcmask 0   ;;  %p530_p2 = scmp.ne.s32.totalorder %s985_s23, 1 }
 0x22d   : > { %v333_v23 = vadd.f32 %v332_v22, %v324_v20 }
 0x22f   : > { %v334_v24 = vrot.slane %v333_v23, 2 }
 0x231   : > { %v335_v25 = vadd.f32 %v334_v24, %v333_v23 }
 0x233   : > { %v336_v26 = vrot.slane %v335_v25, 1  ;;  %344 = sbr.rel (%p530_p2) target bundleno = 580 (0x244), region = 64 }
 0x235   : > { %v337_v28 = vadd.f32 %v336_v26, %v335_v25 }
 0x237   : > { %v338_v29 = vadd.f32 %v337_v28, %v331_v27 }
 0x239   : > { %340 = vst.msk [vmem:[#allocation8] sm:$0x1] %vm339_vm3, %v338_v29 }
 0x240   : > { %v345_v30 = vld [vmem:[#allocation8] sm:$0x1] }
 0x241   : > { %v346_v31 = vmul.f32 0.0625, %v345_v30 }
 0x243   : > { %347 = vst.msk [vmem:[#allocation8] sm:$0x1] %vm339_vm3, %v346_v31 }
 0x244 PF: > { %s532_s7 = sshll.u32 %s985_s23, 7  ;;  %s362_s28 = sshll.u32 %s139_s1, 4  ;;  %s363_s28 = int_to_ptr.vmem [resolvable:$true] %s362_s28 }
 0x245   : > { %s1179_s11 = scalar_lea.hbm %s1244_s3, %s532_s7  ;;  %s1260_s12 = sand.u32 1, %s913_s21  }
 0x246   : > { %s349_s9 = scalar_lea.sflag [#allocation7], %s1260_s12  ;;  %s811_s26 = scalar_lea.vmem %s363_s28, 128 }
 0x247   : > { %p812_p3 = scmp.ne.s32.totalorder %s363_s28, %s811_s26  ;;  %s934_s5 = smov [#allocation6]  }
 0x248   : > { %s815_s24 = sshll.u32 %s934_s5, 4  ;;  %s816_s24 = int_to_ptr.vmem [resolvable:$false] %s815_s24 }
 0x249   : > { %p813_p4 = pnand %p812_p3, %p1004_p10  ;;  %s817_s15 = scalar_lea.vmem %s816_s24, 256 }
 0x24a   : > { %p818_p6 = scmp.lt.s32.totalorder %s363_s28, %s816_s24  ;;  %p819_p8 = scmp.lt.s32.totalorder %s817_s15, %s811_s26 }
 0x24b   : > { %p814_p5 = pneg %p813_p4 }
 0x24c   : > { %p820_p9 = por %p819_p8, %p818_p6 }
 0x24e   : > { %p821_p12 = pnand %p820_p9, %p814_p5 }
 0x250   : > { %824 = shalt.err (!%p821_p12)
}
 0x251   : > { %s825_s6 = scalar_lea.hbm %s1179_s11, 128  ;;  %s829_s19 = scalar_lea.hbm %s1244_s3, 256 }
 0x252   : > { %p826_p13 = scmp.ne.s32.totalorder %s1179_s11, %s825_s6  ;;  %p830_p7 = scmp.lt.u32.totalorder %s1179_s11, %s1244_s3 }
 0x253   : > { %p831_p2 = scmp.lt.u32.totalorder %s829_s19, %s825_s6  ;;  %p833_p4 = scmp.lt.u32.totalorder %s825_s6, %s1179_s11 }
 0x254   : > { %p827_p0 = pnand %p826_p13, %p1004_p10 }
 0x255   : > { %p832_p3 = por %p831_p2, %p830_p7 }
 0x256   : > { %p828_p1 = pneg %p827_p0 }
 0x257   : > { %p834_p5 = por %p833_p4, %p832_p3 }
 0x259   : > { %p835_p6 = pnand %p834_p5, %p828_p1 }
 0x25b   : > { %838 = shalt.err (!%p835_p6)
}
 0x25c   : > { %545 = dma.vmem_to_hbm [thread:$0]  (%p1004_p10), %s363_s28, 128, %s1179_s11, %s349_s9  }
 0x25d   : > { %s935_s17 = smov [#allocation8]   ;;  %p1261_p9 = scmp.eq.s32.totalorder %s985_s23, 1 }
 0x25e   : > { %s373_s14 = sshll.u32 %s935_s17, 4  ;;  %s374_s14 = int_to_ptr.vmem [resolvable:$true] %s373_s14 }
 0x25f   : > { %s839_s30 = scalar_lea.vmem %s374_s14, 16  ;;  %s845_s8 = scalar_lea.vmem %s374_s14, 32 }
 0x260   : > { %p840_p8 = scmp.ne.s32.totalorder %s374_s14, %s839_s30  ;;  %p846_p0 = scmp.lt.s32.totalorder %s374_s14, %s374_s14 }
 0x261   : > { %p847_p7 = scmp.lt.s32.totalorder %s845_s8, %s839_s30 }
 0x262   : > { %p841_p12 = pnand %p840_p8, %p1261_p9 }
 0x263   : > { %p848_p2 = por %p847_p7, %p846_p0 }
 0x264   : > { %p842_p13 = pneg %p841_p12 }
 0x266   : > { %p849_p3 = pnand %p848_p2, %p842_p13 }
 0x268   : > { %852 = shalt.err (!%p849_p3)
}
 0x269   : > { %s853_s29 = scalar_lea.hbm %s1245_s4, 16  ;;  %p1262_p1 = pmov %p1261_p9 }
 0x26a   : > { %p854_p10 = scmp.ne.s32.totalorder %s1245_s4, %s853_s29  ;;  %p859_p6 = scmp.lt.u32.totalorder %s853_s29, %s1245_s4 }
 0x26c   : > { %p855_p4 = pnand %p854_p10, %p1262_p1 }
 0x26e   : > { %p856_p5 = pneg %p855_p4 }
 0x270   : > { %p861_p8 = pnand %p859_p6, %p856_p5 }
 0x272   : > { %864 = shalt.err (!%p861_p8)
}
 0x273   : > { %p1263_p9 = pmov %p1262_p1  ;;  %p1264_p12 = pmov %p1262_p1 }
 0x275   : > { %547 = dma.vmem_to_hbm [thread:$0]  (%p1263_p9), %s374_s14, 16, %s1245_s4, [#allocation9]  }
 0x276   : > { %900 = dma.done.wait (%p1264_p12), [#allocation9], 16   ;;  %p1265_p13 = pmov %p1262_p1 }
 0x278   : > { %902 = vsyncadd (%p1265_p13), [#allocation9], 4294967280 }
 0x279 PF: > { %p557_p0 = scmp.ge.s32.totalorder %s921_s22, 2  ;;  %s389_s26 = sand.u32 1, %s909_s20  }
 0x27a   : > { %s390_s5 = scalar_lea.sflag [#allocation7], %s389_s26 }
 0x27b   : > { %p552_p7 = pnand %p557_p0, %p1008_p11 }
 0x27d   : > { %904 = dma.done.wait (!%p552_p7), %s390_s5, 128  }
 0x27e   : > { %906 = vsyncadd (!%p552_p7), %s390_s5, 4294967168  ;;  %s1267_s22 = sld [smem:[#allocation40_spill]]  ;;  %s1268_s24 = sld [smem:[#allocation39_spill]] }
 0x27f   : > { %s1269_s0 = sld [smem:[#allocation41_spill]]  ;;  %s1270_s20 = smov %s913_s21 }
 0x284   : > { %p22_p2 = scmp.ge.s32.totalorder %s1267_s22, 4   ;;  %s1271_s21 = smov %s1268_s24 }
 0x286   :  { %24 = sbr.rel (!%p22_p2) target bundleno = 19 (0x13), region = 136 }
 0x28d   :  { %395 = vsyncpa [#allocation7], 1 }
 0x28e   :  { %397 = vsyncpa [#allocation7 + $0x1], 1 }
 0x28f   :  { %398 = vsyncpa [#allocation9], 1 }
 0x290   :  { %399 = vsyncmov [#allocation3] }
 0x293   :  { %s400_s23 = vpop.sfrf %399 }
 0x294   :  { %p537_p11 = scmp.ne.s32.totalorder %s400_s23, 0 }
 0x296   :  { %404 = shalt.err (%p537_p11)  }
 0x297   :  { %406 = vsyncmov [#allocation3 + $0x1] }
 0x29a   :  { %s407_s15 = vpop.sfrf %406 }
 0x29b   :  { %p538_p3 = scmp.ne.s32.totalorder %s407_s15, 0 }
 0x29d   :  { %411 = shalt.err (%p538_p3)  }
 0x29e   :  { %413 = vsyncmov [#allocation3 + $0x2] }
 0x2a1   :  { %s414_s6 = vpop.sfrf %413 }
 0x2a2   :  { %p539_p10 = scmp.ne.s32.totalorder %s414_s6, 0 }
 0x2a4   :  { %418 = shalt.err (%p539_p10)  }
 0x2a5   :  { %420 = vsyncmov [#allocation3 + $0x3] }
 0x2a8   :  { %s421_s25 = vpop.sfrf %420 }
 0x2a9   :  { %p540_p1 = scmp.ne.s32.totalorder %s421_s25, 0 }
 0x2ab   :  { %425 = shalt.err (%p540_p1)  }
 0x2ac   :  { %427 = vsyncmov [#allocation3 + $0x4] }
 0x2af   :  { %s428_s2 = vpop.sfrf %427 }
 0x2b0   :  { %p541_p4 = scmp.ne.s32.totalorder %s428_s2, 0 }
 0x2b2   :  { %432 = shalt.err (%p541_p4)  }
 0x2b3   :  { %434 = vsyncmov [#allocation3 + $0x5] }
 0x2b6   :  { %s435_s3 = vpop.sfrf %434 }
 0x2b7   :  { %p542_p5 = scmp.ne.s32.totalorder %s435_s3, 0 }
 0x2b9   :  { %439 = shalt.err (%p542_p5)  }
 0x2ba   :  { %441 = vsyncmov [#allocation3 + $0x6] }
 0x2bd   :  { %s442_s4 = vpop.sfrf %441 }
 0x2be   :  { %p543_p6 = scmp.ne.s32.totalorder %s442_s4, 0 }
 0x2c0   :  { %446 = shalt.err (%p543_p6)  }
 0x2c1   :  { %448 = vsyncmov [#allocation3 + $0x7] }
 0x2c4   :  { %s449_s20 = vpop.sfrf %448 }
 0x2c5   :  { %p544_p8 = scmp.ne.s32.totalorder %s449_s20, 0 }
 0x2c7   :  { %453 = shalt.err (%p544_p8)  }

</bundles_post_ra>
